<compile_context>
chip_gen: v7x
topology: tpu7x:2x2x1
jax: 0.10.0
libtpu: 0.0.40
codegen_flags: <defaults>
</compile_context>

<pallas_src>
import functools

import jax
import jax.numpy as jnp
from jax.experimental import pallas as pl
from jax.experimental.pallas import tpu as pltpu


# ---------------------------------------------------------------------------
# Pallas kernel: Kt shifted matmuls (conv + align fused) + gated activation
# ---------------------------------------------------------------------------
def _temporal_conv_kernel(x_ref, w_ref, b_ref, o_ref, *,
                          Kt, V, T_out, c_out, out_ch, act_func):
    """One grid step == one batch element.

    x_ref : (c_in, T*V)                 input, NCHW row-major flattened over (T, V)
    w_ref : (Kt, out_ch + c_out, c_in)  combined causal-conv + align weights
    b_ref : (out_ch + c_out, 1)         combined bias (f32)
    o_ref : (c_out, T_out*V)            output, NCHW row-major flattened
    """
    TVo = T_out * V

    # Kt shifted matmuls, f32 accumulation. k*V is lane-tile aligned when V%128==0.
    acc = jnp.dot(w_ref[0], x_ref[:, 0:TVo],
                  preferred_element_type=jnp.float32) + b_ref[...]
    for k in range(1, Kt):
        acc = acc + jnp.dot(w_ref[k], x_ref[:, k * V:k * V + TVo],
                            preferred_element_type=jnp.float32)

    x_in = acc[out_ch:]                      # = align(x)[:, :, Kt-1:, :]
    if act_func in ("glu", "gtu"):
        x_p = acc[:c_out]
        x_q = acc[c_out:out_ch]
        z = x_p + x_in
        if act_func == "gtu":
            z = jnp.tanh(z)
        out = z * jax.nn.sigmoid(x_q)
    else:
        z = acc[:out_ch] + x_in
        if act_func == "relu":
            out = jnp.maximum(z, 0.0)
        elif act_func == "leaky_relu":
            out = jnp.where(z >= 0.0, z, 0.01 * z)
        elif act_func == "silu":
            out = z * jax.nn.sigmoid(z)
        else:
            raise NotImplementedError(f"activation {act_func} not implemented")

    o_ref[...] = out.astype(o_ref.dtype)


# ---------------------------------------------------------------------------
# Wrapper: weight folding (one-time, tiny) + pallas_call.  No transposes,
# no im2col, only free contiguous reshapes of x / output.
# ---------------------------------------------------------------------------
def temporal_conv_layer(x, w_conv, b_conv, w_align=None, b_align=None, *,
                        Kt, c_in, c_out, act_func, compute_dtype=None):
    """x: (B, c_in, T, V) float32, NCHW like PyTorch.

    w_conv : (out_ch, c_in, Kt, 1), out_ch = 2*c_out for glu/gtu else c_out
    b_conv : (out_ch,)
    w_align: (c_out, c_in, 1, 1) or None (only used when c_in > c_out)
    b_align: (c_out,) or None
    compute_dtype: e.g. jnp.bfloat16 to halve HBM read traffic (v5e/v6e);
                   accumulation / activations stay f32.
    returns: (B, c_out, T - Kt + 1, V) float32, NCHW.
    """
    B, Cin, T, V = x.shape
    assert Cin == c_in
    T_out = T - Kt + 1
    out_ch = 2 * c_out if act_func in ("glu", "gtu") else c_out
    assert w_conv.shape == (out_ch, c_in, Kt, 1)
    M = out_ch + c_out                       # combined output channels

    # ---- combined weight: conv kernels + Align folded into slice k = Kt-1 ----
    if c_in > c_out:
        wa_mat = w_align[:, :, 0, 0].astype(jnp.float32)        # (c_out, c_in)
        ba_vec = b_align.astype(jnp.float32)
    else:  # identity (c_in == c_out) or zero-padded identity (c_in < c_out)
        wa_mat = jnp.eye(c_out, c_in, dtype=jnp.float32)
        ba_vec = jnp.zeros((c_out,), jnp.float32)

    w_comb = jnp.zeros((Kt, M, c_in), jnp.float32)
    w_comb = w_comb.at[:, :out_ch, :].set(
        jnp.transpose(w_conv[:, :, :, 0], (2, 0, 1)))           # (Kt, out_ch, c_in)
    w_comb = w_comb.at[Kt - 1, out_ch:, :].set(wa_mat)
    b_comb = jnp.concatenate([b_conv.astype(jnp.float32), ba_vec]).reshape(M, 1)

    # ---- free reshape of contiguous NCHW; V stays the fastest (lane) axis ----
    TV, TVo = T * V, T_out * V
    x_flat = x.reshape(B, c_in, TV)
    if compute_dtype is not None:
        x_flat = x_flat.astype(compute_dtype)
        w_comb = w_comb.astype(compute_dtype)

    kernel = functools.partial(_temporal_conv_kernel, Kt=Kt, V=V, T_out=T_out,
                               c_out=c_out, out_ch=out_ch, act_func=act_func)

    itemsize = jnp.dtype(x_flat.dtype).itemsize
    cost = pl.CostEstimate(
        flops=2 * B * Kt * M * c_in * TVo,
        transcendentals=(0 if act_func in ("relu", "leaky_relu")
                         else B * c_out * TVo),
        bytes_accessed=(B * c_in * TV + Kt * M * c_in) * itemsize
                       + M * 4 + B * c_out * TVo * 4,
    )

    # VMEM per step is only c_in*T*V + c_out*T_out*V (+tiny weights) floats,
    # far below the 32 MiB scoped limit for any realistic STGCN shape.
    out = pl.pallas_call(
        kernel,
        out_shape=jax.ShapeDtypeStruct((B, c_out, TVo), jnp.float32),
        grid_spec=pltpu.PrefetchScalarGridSpec(
            num_scalar_prefetch=0,
            grid=(B,),
            in_specs=[
                pl.BlockSpec((None, c_in, TV), lambda b: (b, 0, 0)),  # one batch elem
                pl.BlockSpec((Kt, M, c_in), lambda b: (0, 0, 0)),     # fused weight
                pl.BlockSpec((M, 1), lambda b: (0, 0)),               # fused bias
            ],
            out_specs=pl.BlockSpec((None, c_out, TVo), lambda b: (b, 0, 0)),
        ),
        compiler_params=pltpu.CompilerParams(
            dimension_semantics=("parallel",)),   # batch shards over v7x's 2 TCs
        cost_estimate=cost,
    )(x_flat, w_comb, b_comb)

    return out.reshape(B, c_out, T_out, V)        # free reshape back to NCHW


# ---------------------------------------------------------------------------
# Pure-JAX reference (mirrors the PyTorch forward) for a correctness check
# ---------------------------------------------------------------------------
def _reference(x, w_conv, b_conv, w_align, b_align, *, Kt, c_in, c_out, act_func):
    B, _, T, V = x.shape
    T_out = T - Kt + 1
    conv = sum(
        jnp.einsum('bctv,oc->botv', x[:, :, k:k + T_out, :], w_conv[:, :, k, 0])
        for k in range(Kt)) + b_conv[None, :, None, None]
    if c_in > c_out:
        x_in = (jnp.einsum('bctv,oc->botv', x, w_align[:, :, 0, 0])
                + b_align[None, :, None, None])
    elif c_in < c_out:
        x_in = jnp.concatenate(
            [x, jnp.zeros((B, c_out - c_in, T, V), x.dtype)], axis=1)
    else:
        x_in = x
    x_in = x_in[:, :, Kt - 1:, :]
    if act_func == 'glu':
        return (conv[:, :c_out] + x_in) * jax.nn.sigmoid(conv[:, -c_out:])
    if act_func == 'gtu':
        return jnp.tanh(conv[:, :c_out] + x_in) * jax.nn.sigmoid(conv[:, -c_out:])
    if act_func == 'relu':
        return jnp.maximum(conv + x_in, 0.0)
    if act_func == 'leaky_relu':
        z = conv + x_in
        return jnp.where(z >= 0, z, 0.01 * z)
    if act_func == 'silu':
        z = conv + x_in
        return z * jax.nn.sigmoid(z)
    raise NotImplementedError(act_func)


if __name__ == "__main__":
    # Config 1: glu + Align 1x1-conv path (c_in > c_out).  V = 128 (a realistic
    # STGCN n_vertex) keeps every in-kernel slice and store lane-dense.
    B, c_in, c_out, T, V, Kt = 2, 8, 4, 16, 128, 3
    act_func = "glu"
    out_ch = 2 * c_out

    key = jax.random.PRNGKey(0)
    k_x, k_wc, k_bc, k_wa, k_ba = jax.random.split(key, 5)
    x = jax.random.normal(k_x, (B, c_in, T, V), dtype=jnp.float32)
    w_conv = 0.1 * jax.random.normal(k_wc, (out_ch, c_in, Kt, 1), dtype=jnp.float32)
    b_conv = 0.1 * jax.random.normal(k_bc, (out_ch,), dtype=jnp.float32)
    w_align = 0.1 * jax.random.normal(k_wa, (c_out, c_in, 1, 1), dtype=jnp.float32)
    b_align = 0.1 * jax.random.normal(k_ba, (c_out,), dtype=jnp.float32)

    out = temporal_conv_layer(x, w_conv, b_conv, w_align, b_align,
                              Kt=Kt, c_in=c_in, c_out=c_out, act_func=act_func)
    out = jax.block_until_ready(out)
    ref = _reference(x, w_conv, b_conv, w_align, b_align,
                     Kt=Kt, c_in=c_in, c_out=c_out, act_func=act_func)
    assert out.shape == (B, c_out, T - Kt + 1, V), out.shape
    assert jnp.allclose(out, ref, rtol=1e-4, atol=1e-4), \
        float(jnp.max(jnp.abs(out - ref)))

    # Config 2: relu + zero-padding Align path (c_in < c_out).
    B2, ci2, co2, T2, V2, Kt2 = 2, 4, 8, 12, 128, 3
    k_x2, k_wc2, k_bc2 = jax.random.split(jax.random.PRNGKey(1), 3)
    x2 = jax.random.normal(k_x2, (B2, ci2, T2, V2), dtype=jnp.float32)
    w2 = 0.1 * jax.random.normal(k_wc2, (co2, ci2, Kt2, 1), dtype=jnp.float32)
    b2 = 0.1 * jax.random.normal(k_bc2, (co2,), dtype=jnp.float32)
    out2 = jax.block_until_ready(
        temporal_conv_layer(x2, w2, b2, None, None,
                            Kt=Kt2, c_in=ci2, c_out=co2, act_func="relu"))
    ref2 = _reference(x2, w2, b2, None, None,
                      Kt=Kt2, c_in=ci2, c_out=co2, act_func="relu")
    assert jnp.allclose(out2, ref2, rtol=1e-4, atol=1e-4), \
        float(jnp.max(jnp.abs(out2 - ref2)))

    # Config 1 with bf16 inputs/weights (v5e/v6e HBM-traffic optimization);
    # accumulation + activation epilogue stay f32, so only input rounding remains.
    out_bf16 = jax.block_until_ready(
        temporal_conv_layer(x, w_conv, b_conv, w_align, b_align,
                            Kt=Kt, c_in=c_in, c_out=c_out, act_func=act_func,
                            compute_dtype=jnp.bfloat16))
    assert jnp.allclose(out_bf16, ref, rtol=1e-1, atol=1e-1), \
        float(jnp.max(jnp.abs(out_bf16 - ref)))

    print("KERNEL_OK")
</pallas_src>

<mosaic_0001>
module attributes {stable_mosaic.version = 11 : i64} {
  func.func @_temporal_conv_kernel(%arg0: i32, %arg1: memref<1x8x2048xf32, #tpu.memory_space<vmem>>, %arg2: memref<3x12x8xf32, #tpu.memory_space<vmem>>, %arg3: memref<12x1xf32, #tpu.memory_space<vmem>>, %arg4: memref<1x4x1792xf32, #tpu.memory_space<vmem>>) attributes {dimension_semantics = [#tpu.dimension_semantics<parallel>], iteration_bounds = array<i64: 2>, scalar_prefetch = 0 : i64, scratch_operands = 0 : i64, tpu.core_type = #tpu.core_type<tc>, window_params = [{transform_indices = @transform_0, window_bounds = array<i64: 1, 8, 2048>}, {pipeline_mode = #tpu.pipeline_mode<synchronous>, transform_indices = @transform_1, window_bounds = array<i64: 3, 12, 8>}, {pipeline_mode = #tpu.pipeline_mode<synchronous>, transform_indices = @transform_2, window_bounds = array<i64: 12, 1>}, {transform_indices = @transform_3, window_bounds = array<i64: 1, 4, 1792>}]} {
    %c0 = arith.constant 0 : index
    %c0_0 = arith.constant 0 : index
    %c0_1 = arith.constant 0 : index
    %0 = vector.load %arg2[%c0, %c0_0, %c0_1] : memref<3x12x8xf32, #tpu.memory_space<vmem>>, vector<1x12x8xf32>
    %1 = vector.shape_cast %0 : vector<1x12x8xf32> to vector<12x8xf32>
    %c0_2 = arith.constant 0 : index
    %c0_3 = arith.constant 0 : index
    %c0_4 = arith.constant 0 : index
    %2 = vector.load %arg1[%c0_2, %c0_3, %c0_4] : memref<1x8x2048xf32, #tpu.memory_space<vmem>>, vector<1x8x1792xf32>
    %3 = vector.shape_cast %2 : vector<1x8x1792xf32> to vector<8x1792xf32>
    %cst = arith.constant dense<0.000000e+00> : vector<12x1792xf32>
    %4 = tpu.matmul %1, %3, %cst {dimension_numbers = #tpu.dot_dimension_numbers<[1], [0], [0], [1], [0, 0, 1, 1], [], []>} : vector<12x8xf32>, vector<8x1792xf32>, vector<12x1792xf32> -> vector<12x1792xf32>
    %c0_5 = arith.constant 0 : index
    %c0_6 = arith.constant 0 : index
    %5 = vector.load %arg3[%c0_5, %c0_6] : memref<12x1xf32, #tpu.memory_space<vmem>>, vector<12x1xf32>
    %6 = vector.broadcast %5 : vector<12x1xf32> to vector<12x1792xf32>
    %7 = arith.addf %4, %6 : vector<12x1792xf32>
    %c1 = arith.constant 1 : index
    %c0_7 = arith.constant 0 : index
    %c0_8 = arith.constant 0 : index
    %8 = vector.load %arg2[%c1, %c0_7, %c0_8] : memref<3x12x8xf32, #tpu.memory_space<vmem>>, vector<1x12x8xf32>
    %9 = vector.shape_cast %8 : vector<1x12x8xf32> to vector<12x8xf32>
    %c0_9 = arith.constant 0 : index
    %c0_10 = arith.constant 0 : index
    %c128 = arith.constant 128 : index
    %10 = vector.load %arg1[%c0_9, %c0_10, %c128] : memref<1x8x2048xf32, #tpu.memory_space<vmem>>, vector<1x8x1792xf32>
    %11 = vector.shape_cast %10 : vector<1x8x1792xf32> to vector<8x1792xf32>
    %cst_11 = arith.constant dense<0.000000e+00> : vector<12x1792xf32>
    %12 = tpu.matmul %9, %11, %cst_11 {dimension_numbers = #tpu.dot_dimension_numbers<[1], [0], [0], [1], [0, 0, 1, 1], [], []>} : vector<12x8xf32>, vector<8x1792xf32>, vector<12x1792xf32> -> vector<12x1792xf32>
    %13 = arith.addf %7, %12 : vector<12x1792xf32>
    %c2 = arith.constant 2 : index
    %c0_12 = arith.constant 0 : index
    %c0_13 = arith.constant 0 : index
    %14 = vector.load %arg2[%c2, %c0_12, %c0_13] : memref<3x12x8xf32, #tpu.memory_space<vmem>>, vector<1x12x8xf32>
    %15 = vector.shape_cast %14 : vector<1x12x8xf32> to vector<12x8xf32>
    %c0_14 = arith.constant 0 : index
    %c0_15 = arith.constant 0 : index
    %c256 = arith.constant 256 : index
    %16 = vector.load %arg1[%c0_14, %c0_15, %c256] : memref<1x8x2048xf32, #tpu.memory_space<vmem>>, vector<1x8x1792xf32>
    %17 = vector.shape_cast %16 : vector<1x8x1792xf32> to vector<8x1792xf32>
    %cst_16 = arith.constant dense<0.000000e+00> : vector<12x1792xf32>
    %18 = tpu.matmul %15, %17, %cst_16 {dimension_numbers = #tpu.dot_dimension_numbers<[1], [0], [0], [1], [0, 0, 1, 1], [], []>} : vector<12x8xf32>, vector<8x1792xf32>, vector<12x1792xf32> -> vector<12x1792xf32>
    %19 = arith.addf %13, %18 : vector<12x1792xf32>
    %20 = vector.extract_strided_slice %19 {offsets = [8, 0], sizes = [4, 1792], strides = [1, 1]} : vector<12x1792xf32> to vector<4x1792xf32>
    %21 = vector.extract_strided_slice %19 {offsets = [0, 0], sizes = [4, 1792], strides = [1, 1]} : vector<12x1792xf32> to vector<4x1792xf32>
    %22 = vector.extract_strided_slice %19 {offsets = [4, 0], sizes = [4, 1792], strides = [1, 1]} : vector<12x1792xf32> to vector<4x1792xf32>
    %23 = arith.addf %21, %20 : vector<4x1792xf32>
    %24 = arith.negf %22 : vector<4x1792xf32>
    %25 = math.exp %24 : vector<4x1792xf32>
    %cst_17 = arith.constant 1.000000e+00 : f32
    %26 = vector.broadcast %cst_17 : f32 to vector<4x1792xf32>
    %27 = arith.addf %26, %25 : vector<4x1792xf32>
    %28 = arith.divf %26, %27 : vector<4x1792xf32>
    %29 = arith.mulf %23, %28 : vector<4x1792xf32>
    %c0_18 = arith.constant 0 : index
    %c0_19 = arith.constant 0 : index
    %c0_20 = arith.constant 0 : index
    %30 = vector.load %arg4[%c0_18, %c0_19, %c0_20] : memref<1x4x1792xf32, #tpu.memory_space<vmem>>, vector<1x4x1792xf32>
    %31 = vector.shape_cast %30 : vector<1x4x1792xf32> to vector<4x1792xf32>
    %32 = vector.shape_cast %29 : vector<4x1792xf32> to vector<1x4x1792xf32>
    tpu.vector_store %arg4[%c0_18, %c0_19, %c0_20], %32 {strides = array<i32>} : memref<1x4x1792xf32, #tpu.memory_space<vmem>>, vector<1x4x1792xf32>,
    return
  }
  func.func @transform_0(%arg0: i32) -> (i32, i32, i32) {
    %c0_i32 = arith.constant 0 : i32
    %c0_i32_0 = arith.constant 0 : i32
    %c0_i32_1 = arith.constant 0 : i32
    return %arg0, %c0_i32, %c0_i32_0 : i32, i32, i32
  }
  func.func @transform_1(%arg0: i32) -> (i32, i32, i32) {
    %c0_i32 = arith.constant 0 : i32
    %c0_i32_0 = arith.constant 0 : i32
    %c0_i32_1 = arith.constant 0 : i32
    %c0_i32_2 = arith.constant 0 : i32
    return %c0_i32, %c0_i32_0, %c0_i32_1 : i32, i32, i32
  }
  func.func @transform_2(%arg0: i32) -> (i32, i32) {
    %c0_i32 = arith.constant 0 : i32
    %c0_i32_0 = arith.constant 0 : i32
    %c0_i32_1 = arith.constant 0 : i32
    return %c0_i32, %c0_i32_0 : i32, i32
  }
  func.func @transform_3(%arg0: i32) -> (i32, i32, i32) {
    %c0_i32 = arith.constant 0 : i32
    %c0_i32_0 = arith.constant 0 : i32
    %c0_i32_1 = arith.constant 0 : i32
    return %arg0, %c0_i32, %c0_i32_0 : i32, i32, i32
  }
}

</mosaic_0001>

<bundles_post_ra>
// kernel: tpu_custom_call.1
= control target key start
LH: loop header
LB: loop body
LE: loop exit
PB: predicated region body
PF: predicated region fallthrough
CT: control target
= control target key end

     0   :  { %8 = vsyncpa [#allocation3], 0  ;;  %s3058_s0 = inlined_call_operand.hbm [shape: f32[2,8,2048], index: 0, kind: input, shape index: {}]   ;;  %s3059_s1 = inlined_call_operand.vmem [shape: f32[3,12,8], index: 1, kind: input, shape index: {}]   ;;  %s3060_s2 = inlined_call_operand.vmem [shape: f32[12,1], index: 2, kind: input, shape index: {}]   ;;  %s3061_s3 = inlined_call_operand.hbm [shape: f32[2,4,1792], index: 3, kind: output, shape index: {}]  }
   0x1   :  { %10 = vsyncpa [#allocation3 + $0x1], 0 }
   0x2   :  { %11 = vsyncpa [#allocation4], 0 }
   0x3   :  { %13 = vsyncpa [#allocation4 + $0x1], 0  ;;  %s2602_s12 = smov 0   ;;  %s2604_s13 = smov 0  }
   0x4   :  { %s2606_s14 = smov 0   ;;  %s2608_s15 = smov 0  }
   0x5 LB: > { %s2623_s16 = sadd.s32 4294967295, %s2576_s15   ;;  %s2215_s17 = sadd.s32 4294967294, %s2576_s15   ;;  %s2576_s15 = sphi %s2608_s15, %s3076_s15   ;;  %s2572_s14 = sphi %s2606_s14, %s3075_s14   ;;  %s2568_s13 = sphi %s2604_s13, %s3074_s13   ;;  %s2564_s12 = sphi %s2602_s12, %s3073_s12  }
   0x6   : > { %s2627_s18 = sadd.s32 1, %s2576_s15   ;;  %s26_s19 = sadd.s32 1, %s2572_s14 }
   0x7   : > { %s23_s20 = ssub.s32 %s2576_s15, %s2627_s18  ;;  %p33_p0 = scmp.ne.s32.totalorder %s2572_s14, %s2568_s13 }
   0x8   : > { %p24_p1 = scmp.eq.s32.totalorder %s23_s20, 0  ;;  %p34_p2 = scmp.eq.s32.totalorder %s2576_s15, 0 }
   0x9   : > { %p39_p3 = scmp.ne.s32.totalorder %s2568_s13, %s2564_s12  ;;  %p40_p4 = scmp.eq.s32.totalorder %s2623_s16, 0 }
   0xa   : > { %s2639_s21 = scalar_select %p24_p1, %s2572_s14, %s26_s19  }
   0xb   : > { %p2641_p5 = por %p34_p2, %p33_p0  ;;  %p2645_p6 = por %p40_p4, %p39_p3 }
   0xc   : > { %p105_p7 = scmp.eq.s32.totalorder %s2623_s16, 1  ;;  %p111_p8 = scmp.eq.s32.totalorder %s2215_s17, 1 }
   0xd   : > { %p2387_p10 = scmp.lt.s32.totalorder %s2576_s15, 2  ;;  %s137_s26 = sand.u32 1, %s2572_s14  }
   0xe   : > { %p2652_p11 = por %p105_p7, %p33_p0  ;;  %p2656_p12 = por %p111_p8, %p39_p3 }
   0xf   : > { %s2286_s27 = sshll.u32 %s2576_s15, 11  ;;  %s2218_s28 = sshll.u32 %s137_s26, 7 }
  0x10   : > { %s3065_s24 = scalar_select %p2652_p11, 1, 0 }
  0x11   : > { %s3066_s25 = scalar_select %p2656_p12, 1, 0 }
  0x12   : > { %s2665_s4 = scalar_lea.hbm %s3058_s0, %s2286_s27  ;;  %s141_s5 = scalar_lea.vmem [#allocation2], %s2218_s28 }
  0x13   : > { %s149_s6 = sshll.u32 %s141_s5, 4  ;;  %p2669_p13 = pnand %p2387_p10, %p2641_p5  ;;  %s2673_s6 = int_to_ptr.vmem [resolvable:$true] %s149_s6 }
  0x14   : > { %s138_s8 = scalar_lea.sflag [#allocation3], %s137_s26  ;;  %s2480_s9 = scalar_lea.hbm %s2665_s4, 2048 }
  0x15   : > { %p2481_p2 = scmp.ne.s32.totalorder %s2665_s4, %s2480_s9  ;;  %p2482_p3 = pneg %p2669_p13 }
  0x16   : > { %s2485_s17 = scalar_lea.hbm %s3058_s0, 4096  ;;  %p2486_p5 = scmp.lt.u32.totalorder %s2665_s4, %s3058_s0 }
  0x17   : > { %p2483_p4 = pnand %p2482_p3, %p2481_p2  ;;  %p2487_p8 = scmp.lt.u32.totalorder %s2485_s17, %s2480_s9 }
  0x18   : > { %p2489_p9 = scmp.lt.u32.totalorder %s2480_s9, %s2665_s4 }
  0x19   : > { %p2484_p7 = pneg %p2483_p4  ;;  %p2488_p10 = por %p2487_p8, %p2486_p5 }
  0x1b   : > { %p2490_p0 = por %p2489_p9, %p2488_p10 }
  0x1d   : > { %p2491_p1 = pnand %p2490_p0, %p2484_p7 }
  0x1f   : > { %2494 = shalt.err (!%p2491_p1)
}
  0x20   : > { %s2495_s22 = scalar_lea.vmem %s2673_s6, 2048  ;;  %s2578_s26 = smov [#allocation2]  }
  0x21   : > { %p2496_p2 = scmp.ne.s32.totalorder %s2673_s6, %s2495_s22  ;;  %s2500_s27 = sshll.u32 %s2578_s26, 4  ;;  %s2501_s27 = int_to_ptr.vmem [resolvable:$false] %s2500_s27 }
  0x22   : > { %s2502_s28 = scalar_lea.vmem %s2501_s27, 4096  ;;  %p2503_p11 = scmp.lt.s32.totalorder %s2673_s6, %s2501_s27 }
  0x23   : > { %p2498_p4 = pnand %p2496_p2, %p2482_p3  ;;  %p2504_p5 = scmp.lt.s32.totalorder %s2502_s28, %s2495_s22 }
  0x25   : > { %p2499_p12 = pneg %p2498_p4  ;;  %p2505_p8 = por %p2504_p5, %p2503_p11 }
  0x27   : > { %p2506_p9 = pnand %p2505_p8, %p2499_p12 }
  0x29   : > { %2509 = shalt.err (!%p2506_p9)
}
  0x2a   : > { %2382 = dma.hbm_to_vmem [thread:$0]  (!%p2669_p13), %s2665_s4, 2048, %s2673_s6, %s138_s8  }
  0x2b   : > { %p3068_p0 = scmp.lt.s32.totalorder %s2576_s15, 3  ;;  %p3069_p1 = scmp.ge.s32.totalorder %s2576_s15, 1 }
  0x2d   : > { %p155_p3 = pnand %p3069_p1, %p3068_p0 }
  0x2e   : > { %s2707_s29 = sand.u32 (!%p155_p3), 1, %s2568_s13  }
  0x2f   : > { %158 = sbr.rel (%p155_p3) target bundleno = 399 (0x18f), region = 32  ;;  %s2222_s30 = sshll.u32 (!%p155_p3), %s2707_s29, 7 }
  0x30   : > { %s161_s5 = scalar_lea.sflag (!%p155_p3), [#allocation3], %s2707_s29  ;;  %s2711_s9 = scalar_lea.vmem (!%p155_p3), [#allocation2], %s2222_s30 }
  0x36   : > { %2555 = dma.done.wait (%p2645_p6), %s161_s5, 2048  }
  0x37   : > { %2557 = vsyncadd (%p2645_p6), %s161_s5, 4294965248  ;;  %v2579_v0 = vmov 0.0   ;;  %v2580_v1 = vmov 0   ;;  %v190_v2 = vld [vmem:[%s2711_s9 + $0x8] sm:$0xff]  ;;  %v189_v4 = vld [vmem:[%s2711_s9] sm:$0xff]  ;;  %vm215_vm0 = vcmask 64512  }
  0x38   : > { %286 = vmatprep.mubr.f32.mxu1 %v2579_v0  ;;  %440 = vmatprep.mubr.f32.mxu0 %v2579_v0  ;;  %v2721_v3 = vld [vmem:[%s2711_s9 + $0x28] sm:$0xff]  ;;  %v2726_v5 = vld [vmem:[%s2711_s9 + $0x20] sm:$0xff]  ;;  %v2734_v7 = vld [vmem:[%s2711_s9 + $0x18] sm:$0xff]  ;;  %s2374_s4 = smul.u32 896, %s2623_s16  ;;  %s2131_s16 = scalar_lea.sflag [#allocation4], %s2707_s29 }
  0x39   : > { %2423 = vset.pattern.permute.xlu0 %v2580_v1  ;;  %222 = vmatprep.subr.mxu1 %v190_v2  ;;  %v2731_v6 = vld [vmem:[%s3059_s1] sm:$0xff]  ;;  %v2738_v8 = vld [vmem:[%s2711_s9 + $0x48] sm:$0xff]  ;;  %v2741_v9 = vld [vmem:[%s2711_s9 + $0x10] sm:$0xff]  ;;  %p3070_p11 = scmp.ne.s32.totalorder %s3065_s24, 0  ;;  %s2581_s17 = smov [#allocation5]  }
  0x3a   : > { %376 = vmatprep.subr.mxu0 %v2721_v3  ;;  %223 = vmatpush1.msra.mxu1 %v189_v4  ;;  %v2744_v10 = vld [vmem:[%s2711_s9 + $0x40] sm:$0xff]  ;;  %v2755_v11 = vld [vmem:[%s3059_s1 + $0x8] sm:$0xf]  ;;  %v2783_v15 = vld [vmem:[%s2711_s9 + $0x38] sm:$0xff]  ;;  %s3012_s10 = scalar_lea.hbm %s3061_s3, %s2374_s4  ;;  %s2514_s19 = sshll.u32 %s2581_s17, 4  ;;  %s2515_s19 = int_to_ptr.vmem [resolvable:$false] %s2514_s19 }
  0x3b   : > { %377 = vmatpush1.msra.mxu0 %v2726_v5  ;;  %2223 = vmatmul.mubr.msk.f32.vlgmr.msra.gmra.mrb[0].mxu1 %vm215_vm0, %v2731_v6  ;;  %v2758_v12 = vld [vmem:[%s2711_s9 + $0x68] sm:$0xff]  ;;  %v2765_v13 = vld [vmem:[%s2711_s9 + $0x60] sm:$0xff]  ;;  %v2801_v17 = vld [vmem:[%s2711_s9 + $0x30] sm:$0xff]  ;;  %s2516_s20 = scalar_lea.vmem %s2515_s19, 1792 }
  0x3c   : > { %299 = vmatprep.subr.mxu1 %v2734_v7  ;;  %2227 = vmatmul.mubr.msk.f32.vlgmr.msra.gmra.mrb[0].mxu0 %vm215_vm0, %v2731_v6  ;;  %v203_v14 = vld [vmem:[%s3060_s2] sm:$0xff]  ;;  %v204_v16 = vld [vmem:[%s3060_s2 + $0x8] sm:$0xf]  ;;  %v2807_v18 = vld [vmem:[%s2711_s9 + $0x58] sm:$0xff] }
  0x3d   : > { %530 = vmatprep.subr.mxu0 %v2738_v8  ;;  %300 = vmatpush1.msra.mxu1 %v2741_v9  ;;  %v2237_v19 = vld [vmem:[%s3059_s1 + $0x10] sm:$0xff]  ;;  %v2238_v21 = vld [vmem:[%s3059_s1 + $0x18] sm:$0xf]  ;;  %v2253_v23 = vld [vmem:[%s3059_s1 + $0x20] sm:$0xff] }
  0x3e   : > { %531 = vmatpush1.msra.mxu0 %v2744_v10  ;;  %292 = vmatprep.mubr.f32.mxu1 %v2579_v0  ;;  %v2818_v20 = vld [vmem:[%s2711_s9 + $0x50] sm:$0xff]  ;;  %v2254_v24 = vld [vmem:[%s3059_s1 + $0x28] sm:$0xf]  ;;  %v1367_v25 = vld [vmem:[%s2711_s9 + $0x78] sm:$0xff] }
  0x3f   : > { %594 = vmatprep.mubr.f32.mxu0 %v2579_v0  ;;  %2224 = vmatmul.mubr.msk.f32.gmra.mrb[2].mxu1 %vm215_vm0, %v2755_v11  ;;  %v2843_v22 = vld [vmem:[%s2711_s9 + $0x70] sm:$0xff]  ;;  %s2373_s9 = smul.u32 56, %s2707_s29 }
  0x40   : > { %684 = vmatprep.subr.mxu0 %v2758_v12  ;;  %2231 = vmatmul.mubr.msk.f32.vlgmr.msra.gmra.mrb[2].mxu0 %vm215_vm0, %v2731_v6 }
  0x41   : > { %363 = vmatprep.mubr.f32.mxu1 %v2579_v0  ;;  %685 = vmatpush1.msra.mxu0 %v2765_v13  ;;  %s2988_s23 = scalar_lea.vmem [#allocation5], %s2373_s9 }
  0x42   : > { %600 = vmatprep.mubr.f32.mxu0 %v2579_v0  ;;  %2287 = vmatprep.subr.mxu1 %v2721_v3  ;;  %s2145_s6 = sshll.u32 %s2988_s23, 4  ;;  %s3014_s6 = int_to_ptr.vmem [resolvable:$true] %s2145_s6 }
  0x43   : > { %784 = vmatprep.subr.mxu0 %v2741_v9  ;;  %2225 = vmatmul.mubr.msk.f32.vlgmr.msra.gmra.mrb[4].mxu1 %vm215_vm0, %v2731_v6  ;;  %s2510_s11 = scalar_lea.vmem %s3014_s6, 896  ;;  %p2517_p7 = scmp.lt.s32.totalorder %s3014_s6, %s2515_s19 }
  0x44   : > { %207 = vperm.xlu0 %2423, %v203_v14   ;;  %2232 = vmatmul.mubr.msk.f32.gmra.mrb[4].mxu0 %vm215_vm0, %v2755_v11  ;;  %p2511_p6 = scmp.ne.s32.totalorder %s3014_s6, %s2510_s11  ;;  %p2518_p10 = scmp.lt.s32.totalorder %s2516_s20, %s2510_s11 }
  0x45   : > { %2288 = vmatpush1.msra.mxu1 %v2726_v5  ;;  %369 = vmatprep.mubr.f32.mxu1 %v2579_v0 }
  0x46   : > { %748 = vmatprep.mubr.f32.mxu0 %v2579_v0  ;;  %453 = vmatprep.subr.mxu1 %v2783_v15  ;;  %p2512_p12 = pnand %p2511_p6, %p3070_p11  ;;  %p2519_p2 = por %p2518_p10, %p2517_p7 }
  0x47   : > { %2226 = vmatmul.mubr.msk.f32.gmra.mrb[6].mxu1 %vm215_vm0, %v2755_v11 }
  0x48   : > { %212 = vperm.xlu0 %2423, %v204_v16   ;;  %2235 = vmatmul.mubr.msk.f32.vlgmr.msra.gmra.mrb[6].mxu0 %vm215_vm0, %v2731_v6  ;;  %p2513_p13 = pneg %p2512_p12 }
  0x49   : > { %446 = vmatprep.mubr.f32.mxu1 %v2579_v0  ;;  %785 = vmatpush1.msra.mxu0 %v190_v2 }
  0x4a   : > { %754 = vmatprep.mubr.f32.mxu0 %v2579_v0  ;;  %938 = vmatprep.subr.mxu0 %v2801_v17  ;;  %p2520_p4 = pnand %p2519_p2, %p2513_p13 }
  0x4b   : > { %2228 = vmatmul.mubr.msk.f32.vlgmr.msra.gmra.mrb[8].mxu1 %vm215_vm0, %v2755_v11 }
  0x4c   : > { %2236 = vmatmul.mubr.msk.f32.gmra.mrb[8].mxu0 %vm215_vm0, %v2755_v11  ;;  %454 = vmatpush1.msra.mxu1 %v2801_v17 }
  0x4d   : > { %517 = vmatprep.mubr.f32.mxu1 %v2579_v0  ;;  %848 = vmatprep.mubr.f32.mxu0 %v2579_v0 }
  0x4e   : > { %607 = vmatprep.subr.mxu1 %v2807_v18 }
  0x4f   : > { %2229 = vmatmul.mubr.msk.f32.vlgmr.msra.gmra.mrb[10].mxu1 %vm215_vm0, %v2731_v6 }
  0x50   : > { %2239 = vmatmul.mubr.msk.f32.vlgmr.msra.gmra.mrb[10].mxu0 %vm215_vm0, %v2237_v19  ;;  %608 = vmatpush1.msra.mxu1 %v2818_v20 }
  0x51   : > { %939 = vmatpush1.msra.mxu0 %v2721_v3  ;;  %523 = vmatprep.mubr.f32.mxu1 %v2579_v0 }
  0x52   : > { %854 = vmatprep.mubr.f32.mxu0 %v2579_v0  ;;  %861 = vmatprep.subr.mxu1 %v2726_v5 }
  0x53   : > { %2230 = vmatmul.mubr.msk.f32.gmra.mrb[12].mxu1 %vm215_vm0, %v2755_v11  ;;  %1092 = vmatprep.subr.mxu0 %v2818_v20 }
  0x54   : > { %2240 = vmatmul.mubr.msk.f32.gmra.mrb[12].mxu0 %vm215_vm0, %v2238_v21  ;;  %671 = vmatprep.mubr.f32.mxu1 %v2579_v0 }
  0x55   : > { %1002 = vmatprep.mubr.f32.mxu0 %v2579_v0 }
  0x57   : > { %2233 = vmatmul.mubr.msk.f32.vlgmr.msra.gmra.mrb[14].mxu1 %vm215_vm0, %v2731_v6 }
  0x58   : > { %2243 = vmatmul.mubr.msk.f32.vlgmr.msra.gmra.mrb[0].mxu0 %vm215_vm0, %v2237_v19  ;;  %862 = vmatpush1.msra.mxu1 %v2734_v7 }
  0x59   : > { %1093 = vmatpush1.msra.mxu0 %v2738_v8  ;;  %677 = vmatprep.mubr.f32.mxu1 %v2579_v0 }
  0x5a   : > { %1008 = vmatprep.mubr.f32.mxu0 %v2579_v0  ;;  %1015 = vmatprep.subr.mxu1 %v2744_v10 }
  0x5b   : > { %2234 = vmatmul.mubr.msk.f32.gmra.mrb[16].mxu1 %vm215_vm0, %v2755_v11  ;;  %1246 = vmatprep.subr.mxu0 %v2843_v22 }
  0x5c   : > { %2244 = vmatmul.mubr.msk.f32.gmra.mrb[14].mxu0 %vm215_vm0, %v2238_v21  ;;  %925 = vmatprep.mubr.f32.mxu1 %v2579_v0 }
  0x5d   : > { %1156 = vmatprep.mubr.f32.mxu0 %v2579_v0 }
  0x5f   : > { %2241 = vmatmul.mubr.msk.f32.vlgmr.msra.gmra.mrb[4].mxu1 %vm215_vm0, %v2237_v19 }
  0x60   : > { %2247 = vmatmul.mubr.msk.f32.vlgmr.msra.gmra.mrb[2].mxu0 %vm215_vm0, %v2237_v19  ;;  %1016 = vmatpush1.msra.mxu1 %v2783_v15 }
  0x61   : > { %1247 = vmatpush1.msra.mxu0 %v2758_v12  ;;  %931 = vmatprep.mubr.f32.mxu1 %v2579_v0 }
  0x62   : > { %1162 = vmatprep.mubr.f32.mxu0 %v2579_v0  ;;  %1169 = vmatprep.subr.mxu1 %v2765_v13 }
  0x63   : > { %2242 = vmatmul.mubr.msk.f32.gmra.mrb[6].mxu1 %vm215_vm0, %v2238_v21  ;;  %1374 = vmatprep.subr.mxu0 %v2734_v7 }
  0x64   : > { %2248 = vmatmul.mubr.msk.f32.gmra.mrb[4].mxu0 %vm215_vm0, %v2238_v21  ;;  %1079 = vmatprep.mubr.f32.mxu1 %v2579_v0 }
  0x65   : > { %1310 = vmatprep.mubr.f32.mxu0 %v2579_v0 }
  0x67   : > { %2245 = vmatmul.mubr.msk.f32.vlgmr.msra.gmra.mrb[10].mxu1 %vm215_vm0, %v2237_v19 }
  0x68   : > { %2251 = vmatmul.mubr.msk.f32.vlgmr.msra.gmra.mrb[6].mxu0 %vm215_vm0, %v2237_v19  ;;  %1170 = vmatpush1.msra.mxu1 %v2807_v18 }
  0x69   : > { %1375 = vmatpush1.msra.mxu0 %v2741_v9  ;;  %1085 = vmatprep.mubr.f32.mxu1 %v2579_v0 }
  0x6a   : > { %1316 = vmatprep.mubr.f32.mxu0 %v2579_v0  ;;  %1451 = vmatprep.subr.mxu1 %v2721_v3 }
  0x6b   : > { %2246 = vmatmul.mubr.msk.f32.gmra.mrb[12].mxu1 %vm215_vm0, %v2238_v21  ;;  %1528 = vmatprep.subr.mxu0 %v2783_v15 }
  0x6c   : > { %2252 = vmatmul.mubr.msk.f32.gmra.mrb[8].mxu0 %vm215_vm0, %v2238_v21  ;;  %1233 = vmatprep.mubr.f32.mxu1 %v2579_v0 }
  0x6d   : > { %1438 = vmatprep.mubr.f32.mxu0 %v2579_v0 }
  0x6f   : > { %2249 = vmatmul.mubr.msk.f32.vlgmr.msra.gmra.mrb[14].mxu1 %vm215_vm0, %v2237_v19 }
  0x70   : > { %2255 = vmatmul.mubr.msk.f32.vlgmr.msra.gmra.mrb[10].mxu0 %vm215_vm0, %v2253_v23  ;;  %1452 = vmatpush1.msra.mxu1 %v2726_v5 }
  0x71   : > { %1529 = vmatpush1.msra.mxu0 %v2801_v17  ;;  %1239 = vmatprep.mubr.f32.mxu1 %v2579_v0 }
  0x72   : > { %1444 = vmatprep.mubr.f32.mxu0 %v2579_v0  ;;  %1605 = vmatprep.subr.mxu1 %v2738_v8 }
  0x73   : > { %2250 = vmatmul.mubr.msk.f32.gmra.mrb[16].mxu1 %vm215_vm0, %v2238_v21  ;;  %1682 = vmatprep.subr.mxu0 %v2807_v18 }
  0x74   : > { %2256 = vmatmul.mubr.msk.f32.gmra.mrb[12].mxu0 %vm215_vm0, %v2254_v24  ;;  %1515 = vmatprep.mubr.f32.mxu1 %v2579_v0 }
  0x75   : > { %1592 = vmatprep.mubr.f32.mxu0 %v2579_v0 }
  0x77   : > { %2257 = vmatmul.mubr.msk.f32.vlgmr.msra.gmra.mrb[4].mxu1 %vm215_vm0, %v2253_v23 }
  0x78   : > { %2259 = vmatmul.mubr.msk.f32.vlgmr.msra.gmra.mrb[0].mxu0 %vm215_vm0, %v2253_v23  ;;  %1606 = vmatpush1.msra.mxu1 %v2744_v10 }
  0x79   : > { %1683 = vmatpush1.msra.mxu0 %v2818_v20  ;;  %1521 = vmatprep.mubr.f32.mxu1 %v2579_v0 }
  0x7a   : > { %1598 = vmatprep.mubr.f32.mxu0 %v2579_v0  ;;  %1759 = vmatprep.subr.mxu1 %v2758_v12 }
  0x7b   : > { %2258 = vmatmul.mubr.msk.f32.gmra.mrb[6].mxu1 %vm215_vm0, %v2254_v24  ;;  %1836 = vmatprep.subr.mxu0 %v1367_v25 }
  0x7c   : > { %2260 = vmatmul.mubr.msk.f32.gmra.mrb[14].mxu0 %vm215_vm0, %v2254_v24  ;;  %1669 = vmatprep.mubr.f32.mxu1 %v2579_v0 }
  0x7d   : > { %1746 = vmatprep.mubr.f32.mxu0 %v2579_v0 }
  0x7f   : > { %2261 = vmatmul.mubr.msk.f32.vlgmr.msra.gmra.mrb[10].mxu1 %vm215_vm0, %v2253_v23 }
  0x80   : > { %2263 = vmatmul.mubr.msk.f32.vlgmr.msra.gmra.mrb[2].mxu0 %vm215_vm0, %v2253_v23  ;;  %1760 = vmatpush1.msra.mxu1 %v2765_v13 }
  0x81   : > { %1837 = vmatpush1.msra.mxu0 %v2843_v22  ;;  %1675 = vmatprep.mubr.f32.mxu1 %v2579_v0 }
  0x82   : > { %1752 = vmatprep.mubr.f32.mxu0 %v2579_v0 }
  0x83   : > { %2262 = vmatmul.mubr.msk.f32.gmra.mrb[12].mxu1 %vm215_vm0, %v2254_v24 }
  0x84   : > { %2264 = vmatmul.mubr.msk.f32.gmra.mrb[4].mxu0 %vm215_vm0, %v2254_v24  ;;  %1823 = vmatprep.mubr.f32.mxu1 %v2579_v0 }
  0x85   : > { %1900 = vmatprep.mubr.f32.mxu0 %v2579_v0 }
  0x87   : > { %2265 = vmatmul.mubr.msk.f32.vlgmr.msra.gmra.mrb[14].mxu1 %vm215_vm0, %v2253_v23 }
  0x88   : > { %2267 = vmatmul.mubr.msk.f32.vlgmr.msra.gmra.mrb[6].mxu0 %vm215_vm0, %v2253_v23  ;;  %1829 = vmatprep.mubr.f32.mxu1 %v2579_v0 }
  0x89   : > { %1906 = vmatprep.mubr.f32.mxu0 %v2579_v0 }
  0x8b   : > { %2266 = vmatmul.mubr.msk.f32.gmra.mrb[16].mxu1 %vm215_vm0, %v2254_v24 }
  0x8c   : > { %2268 = vmatmul.mubr.msk.f32.gmra.mrb[8].mxu0 %vm215_vm0, %v2254_v24 }
  0xc3   : > { %v2925_v32 = vpop.permute.xlu0 %207 }
  0xc7   : > { %v2929_v35 = vpop.permute.xlu0 %212 }
 0x10e   : > { %v288_v26 = vpop.f32.mrb[0].mxu1 }
 0x10f   : > { %v290_v27 = vpop.f32.mrb[1].mxu1  ;;  %v289_v33 = vadd.f32 %v288_v26, %v2925_v32 }
 0x110   : > { %v291_v34 = vadd.f32 %v290_v27, %v2925_v32 }
 0x112   : > { %v294_v28 = vpop.f32.mrb[2].mxu1 }
 0x113   : > { %v296_v29 = vpop.f32.mrb[3].mxu1  ;;  %v295_v41 = vadd.f32 %v294_v28, %v2929_v35 }
 0x114   : > { %v297_v42 = vadd.f32 %v296_v29, %v2929_v35 }
 0x11e   : > { %v448_v30 = vpop.f32.mrb[8].mxu1 }
 0x11f   : > { %v450_v31 = vpop.f32.mrb[9].mxu1  ;;  %v449_v59 = vadd.f32 %v448_v30, %v2929_v35 }
 0x120   : > { %v451_v63 = vadd.f32 %v450_v31, %v2929_v35 }
 0x143   : > { %v1440_v36 = vpop.f32.mrb[10].mxu0 }
 0x144   : > { %v2290_v37 = vadd.f32 %v1440_v36, %v289_v33  ;;  %v1442_v38 = vpop.f32.mrb[11].mxu0 }
 0x145   : > { %v2292_v39 = vadd.f32 %v1442_v38, %v291_v34 }
 0x146   : > { %v2269_v40 = vmul.f32 -1.442695, %v2290_v37 }
 0x147   : > { %v2270_v43 = vmul.f32 -1.442695, %v2292_v39  ;;  %v1446_v44 = vpop.f32.mrb[12].mxu0 }
 0x148   : > { %2424 = vpow2.f32 %v2269_v40  ;;  %v2294_v45 = vadd.f32 %v1446_v44, %v295_v41  ;;  %v1448_v46 = vpop.f32.mrb[13].mxu0 }
 0x149   : > { %2426 = vpow2.f32 %v2270_v43  ;;  %v2296_v47 = vadd.f32 %v1448_v46, %v297_v42 }
 0x14a   : > { %v2933_v48 = vadd.f32 %v2294_v45, %v2290_v37  ;;  %v1517_v49 = vpop.f32.mrb[4].mxu1 }
 0x14b   : > { %v2935_v50 = vadd.f32 %v2296_v47, %v2292_v39  ;;  %v2297_v51 = vadd.f32 %v1517_v49, %v2925_v32  ;;  %v1594_v52 = vpop.f32.mrb[0].mxu0  ;;  %v1519_v53 = vpop.f32.mrb[5].mxu1 }
 0x14c   : > { %v2301_v54 = vadd.f32 %v1594_v52, %v2925_v32  ;;  %v2298_v55 = vadd.f32 %v1519_v53, %v2925_v32  ;;  %v1596_v56 = vpop.f32.mrb[1].mxu0 }
 0x14d   : > { %v2271_v57 = vmul.f32 -1.442695, %v2297_v51  ;;  %v2302_v58 = vadd.f32 %v1596_v56, %v2925_v32 }
 0x14e   : > { %v2273_v60 = vmul.f32 -1.442695, %v2301_v54  ;;  %v2272_v61 = vmul.f32 -1.442695, %v2298_v55  ;;  %v1523_v62 = vpop.f32.mrb[6].mxu1 }
 0x14f   : > { %2428 = vpow2.f32 %v2271_v57  ;;  %v2274_v0 = vmul.f32 -1.442695, %v2302_v58  ;;  %v2299_v1 = vadd.f32 %v1523_v62, %v2929_v35  ;;  %v1600_v2 = vpop.f32.mrb[14].mxu0  ;;  %v1525_v3 = vpop.f32.mrb[7].mxu1 }
 0x150   : > { %2430 = vpow2.f32 %v2273_v60  ;;  %v2304_v4 = vadd.f32 %v1600_v2, %v449_v59  ;;  %v2300_v5 = vadd.f32 %v1525_v3, %v2929_v35  ;;  %v1602_v6 = vpop.f32.mrb[15].mxu0 }
 0x151   : > { %2432 = vpow2.f32 %v2272_v61  ;;  %v2945_v7 = vadd.f32 %v2299_v1, %v2297_v51  ;;  %v2306_v8 = vadd.f32 %v1602_v6, %v451_v63 }
 0x152   : > { %v2425_v9 = vpop.eup %2424  ;;  %2434 = vpow2.f32 %v2274_v0  ;;  %v2947_v10 = vadd.f32 %v2304_v4, %v2301_v54  ;;  %v2949_v11 = vadd.f32 %v2300_v5, %v2298_v55  ;;  %v1671_v12 = vpop.f32.mrb[10].mxu1 }
 0x153   : > { %v2427_v13 = vpop.eup %2426  ;;  %v1997_v14 = vadd.f32 1.0, %v2425_v9  ;;  %v2951_v15 = vadd.f32 %v2306_v8, %v2302_v58  ;;  %v2307_v16 = vadd.f32 %v1671_v12, %v2925_v32  ;;  %v1748_v17 = vpop.f32.mrb[2].mxu0 }
 0x154   : > { %v1673_v18 = vpop.f32.mrb[11].mxu1  ;;  %v1998_v19 = vadd.f32 1.0, %v2427_v13  ;;  %v2311_v20 = vadd.f32 %v1748_v17, %v2925_v32  ;;  %v1750_v22 = vpop.f32.mrb[3].mxu0 }
 0x155   : > { %v2308_v21 = vadd.f32 %v1673_v18, %v2925_v32  ;;  %2436 = vrcp.f32 %v1997_v14  ;;  %v2275_v23 = vmul.f32 -1.442695, %v2307_v16  ;;  %v2312_v24 = vadd.f32 %v1750_v22, %v2925_v32 }
 0x156   : > { %2438 = vrcp.f32 %v1998_v19  ;;  %v2277_v25 = vmul.f32 -1.442695, %v2311_v20  ;;  %v1677_v27 = vpop.f32.mrb[12].mxu1 }
 0x157   : > { %v2276_v26 = vmul.f32 -1.442695, %v2308_v21  ;;  %2440 = vpow2.f32 %v2275_v23  ;;  %v2278_v28 = vmul.f32 -1.442695, %v2312_v24  ;;  %v2309_v29 = vadd.f32 %v1677_v27, %v2929_v35  ;;  %v1754_v30 = vpop.f32.mrb[4].mxu0  ;;  %v1679_v31 = vpop.f32.mrb[13].mxu1 }
 0x158   : > { %2442 = vpow2.f32 %v2277_v25  ;;  %v2313_v33 = vadd.f32 %v1754_v30, %v2929_v35  ;;  %v2310_v34 = vadd.f32 %v1679_v31, %v2929_v35  ;;  %v1756_v36 = vpop.f32.mrb[5].mxu0 }
 0x159   : > { %v2429_v37 = vpop.eup %2428  ;;  %2444 = vpow2.f32 %v2276_v26  ;;  %v2960_v38 = vadd.f32 %v2309_v29, %v2307_v16  ;;  %v2314_v39 = vadd.f32 %v1756_v36, %v2929_v35 }
 0x15a   : > { %v2431_v40 = vpop.eup %2430  ;;  %v1999_v41 = vadd.f32 1.0, %v2429_v37  ;;  %2446 = vpow2.f32 %v2278_v28  ;;  %v2963_v42 = vadd.f32 %v2313_v33, %v2311_v20  ;;  %v2965_v43 = vadd.f32 %v2310_v34, %v2308_v21  ;;  %v1825_v44 = vpop.f32.mrb[14].mxu1 }
 0x15b   : > { %v2433_v45 = vpop.eup %2432  ;;  %v2001_v46 = vadd.f32 1.0, %v2431_v40  ;;  %v2967_v47 = vadd.f32 %v2314_v39, %v2312_v24  ;;  %v2315_v49 = vadd.f32 %v1825_v44, %v2925_v32  ;;  %v1902_v51 = vpop.f32.mrb[6].mxu0 }
 0x15c   : > { %v1827_v52 = vpop.f32.mrb[15].mxu1  ;;  %v2435_v53 = vpop.eup %2434  ;;  %2448 = vrcp.f32 %v1999_v41  ;;  %v2000_v54 = vadd.f32 1.0, %v2433_v45  ;;  %v2319_v55 = vadd.f32 %v1902_v51, %v2925_v32 }
 0x15d   : > { %v2316_v56 = vadd.f32 %v1827_v52, %v2925_v32  ;;  %v1904_v57 = vpop.f32.mrb[7].mxu0  ;;  %2450 = vrcp.f32 %v2001_v46  ;;  %v2002_v58 = vadd.f32 1.0, %v2435_v53  ;;  %v2279_v59 = vmul.f32 -1.442695, %v2315_v49 }
 0x15e   : > { %v2320_v60 = vadd.f32 %v1904_v57, %v2925_v32  ;;  %2452 = vrcp.f32 %v2000_v54  ;;  %v2281_v61 = vmul.f32 -1.442695, %v2319_v55  ;;  %v1831_v63 = vpop.f32.mrb[16].mxu1 }
 0x15f   : > { %v2280_v62 = vmul.f32 -1.442695, %v2316_v56  ;;  %v2437_v0 = vpop.eup %2436  ;;  %2454 = vrcp.f32 %v2002_v58  ;;  %v2317_v2 = vadd.f32 %v1831_v63, %v2929_v35  ;;  %v1908_v3 = vpop.f32.mrb[8].mxu0 }
 0x160   : > { %v2282_v1 = vmul.f32 -1.442695, %v2320_v60  ;;  %v1833_v4 = vpop.f32.mrb[17].mxu1  ;;  %v2439_v5 = vpop.eup %2438  ;;  %v2053_v6 = vrot.slane %v2437_v0, 4  ;;  %2456 = vpow2.f32 %v2279_v59  ;;  %v2321_v8 = vadd.f32 %v1908_v3, %v2929_v35 }
 0x161   : > { %v2318_v9 = vadd.f32 %v1833_v4, %v2929_v35  ;;  %v1910_v32 = vpop.f32.mrb[9].mxu0  ;;  %v2441_v12 = vpop.eup %2440  ;;  %v2054_v13 = vrot.slane %v2439_v5, 4  ;;  %2458 = vpow2.f32 %v2281_v61  ;;  %v2977_v14 = vadd.f32 %v2317_v2, %v2315_v49 }
 0x162   : > { %v2322_v16 = vadd.f32 %v1910_v32, %v2929_v35  ;;  %v2443_v17 = vpop.eup %2442  ;;  %v2081_v18 = vmul.f32 %v2053_v6, %v2933_v48  ;;  %v2003_v19 = vadd.f32 1.0, %v2441_v12  ;;  %2460 = vpow2.f32 %v2280_v62 }
 0x163   : > { %v2981_v20 = vadd.f32 %v2321_v8, %v2319_v55  ;;  %v2445_v21 = vpop.eup %2444  ;;  %v2082_v22 = vmul.f32 %v2054_v13, %v2935_v50  ;;  %v2005_v23 = vadd.f32 1.0, %v2443_v17  ;;  %2462 = vpow2.f32 %v2282_v1 }
 0x164   : > { %v2984_v24 = vadd.f32 %v2318_v9, %v2316_v56  ;;  %v2447_v25 = vpop.eup %2446  ;;  %2464 = vrcp.f32 %v2003_v19  ;;  %v2004_v26 = vadd.f32 1.0, %v2445_v21  ;;  %v2986_v27 = vadd.f32 %v2322_v16, %v2320_v60 }
 0x165   : > { %v2109_v35 = vcombine.low %v2081_v18, %v2082_v22  ;;  %2466 = vrcp.f32 %v2005_v23  ;;  %v2006_v28 = vadd.f32 1.0, %v2447_v25 }
 0x166   : > { %v2449_v48 = vpop.eup %2448  ;;  %2468 = vrcp.f32 %v2004_v26 }
 0x167   : > { %v2451_v29 = vpop.eup %2450  ;;  %2123 = vst [vmem:[%s2988_s23] sm:$0xff] %v2109_v35  ;;  %v2055_v50 = vrot.slane %v2449_v48, 4  ;;  %2470 = vrcp.f32 %v2006_v28 }
 0x168   : > { %v2453_v30 = vpop.eup %2452  ;;  %v2057_v31 = vrot.slane %v2451_v29, 4 }
 0x169   : > { %v2455_v33 = vpop.eup %2454  ;;  %v2083_v34 = vmul.f32 %v2055_v50, %v2945_v7  ;;  %v2056_v36 = vrot.slane %v2453_v30, 4 }
 0x16a   : > { %v2457_v37 = vpop.eup %2456  ;;  %v2085_v39 = vmul.f32 %v2057_v31, %v2947_v10  ;;  %v2058_v40 = vrot.slane %v2455_v33, 4 }
 0x16b   : > { %v2459_v41 = vpop.eup %2458  ;;  %v2084_v44 = vmul.f32 %v2056_v36, %v2949_v11  ;;  %v2007_v45 = vadd.f32 1.0, %v2457_v37 }
 0x16c   : > { %v2461_v46 = vpop.eup %2460  ;;  %v2086_v49 = vmul.f32 %v2058_v40, %v2951_v15  ;;  %v2009_v51 = vadd.f32 1.0, %v2459_v41 }
 0x16d   : > { %v2463_v52 = vpop.eup %2462  ;;  %v2110_v53 = vcombine.low %v2083_v34, %v2084_v44  ;;  %2472 = vrcp.f32 %v2007_v45  ;;  %v2008_v54 = vadd.f32 1.0, %v2461_v46 }
 0x16e   : > { %v2465_v7 = vpop.eup %2464  ;;  %v2111_v55 = vcombine.low %v2085_v39, %v2086_v49  ;;  %2474 = vrcp.f32 %v2009_v51  ;;  %v2010_v56 = vadd.f32 1.0, %v2463_v52 }
 0x16f   : > { %v2467_v10 = vpop.eup %2466  ;;  %2124 = vst [vmem:[%s2988_s23 + $0x8] sm:$0xff] %v2110_v53  ;;  %v2059_v57 = vrot.slane %v2465_v7, 4  ;;  %2476 = vrcp.f32 %v2008_v54 }
 0x170   : > { %v2469_v11 = vpop.eup %2468  ;;  %2125 = vst [vmem:[%s2988_s23 + $0x10] sm:$0xff] %v2111_v55  ;;  %v2061_v58 = vrot.slane %v2467_v10, 4  ;;  %2478 = vrcp.f32 %v2010_v56 }
 0x171   : > { %v2471_v15 = vpop.eup %2470  ;;  %v2087_v59 = vmul.f32 %v2059_v57, %v2960_v38  ;;  %v2060_v60 = vrot.slane %v2469_v11, 4 }
 0x172   : > { %v2089_v61 = vmul.f32 %v2061_v58, %v2963_v42  ;;  %v2062_v62 = vrot.slane %v2471_v15, 4 }
 0x173   : > { %v2088_v63 = vmul.f32 %v2060_v60, %v2965_v43 }
 0x174   : > { %v2090_v0 = vmul.f32 %v2062_v62, %v2967_v47 }
 0x175   : > { %v2112_v1 = vcombine.low %v2087_v59, %v2088_v63 }
 0x176   : > { %v2113_v2 = vcombine.low %v2089_v61, %v2090_v0 }
 0x177   : > { %v2473_v3 = vpop.eup %2472  ;;  %2126 = vst [vmem:[%s2988_s23 + $0x18] sm:$0xff] %v2112_v1 }
 0x178   : > { %v2475_v4 = vpop.eup %2474  ;;  %2127 = vst [vmem:[%s2988_s23 + $0x20] sm:$0xff] %v2113_v2  ;;  %v2063_v5 = vrot.slane %v2473_v3, 4 }
 0x179   : > { %v2477_v6 = vpop.eup %2476  ;;  %v2065_v38 = vrot.slane %v2475_v4, 4 }
 0x17a   : > { %v2479_v42 = vpop.eup %2478  ;;  %v2091_v8 = vmul.f32 %v2063_v5, %v2977_v14  ;;  %v2064_v43 = vrot.slane %v2477_v6, 4 }
 0x17b   : > { %v2093_v47 = vmul.f32 %v2065_v38, %v2981_v20  ;;  %v2066_v9 = vrot.slane %v2479_v42, 4 }
 0x17c   : > { %v2092_v32 = vmul.f32 %v2064_v43, %v2984_v24 }
 0x17d   : > { %v2094_v12 = vmul.f32 %v2066_v9, %v2986_v27 }
 0x17e   : > { %v2114_v13 = vcombine.low %v2091_v8, %v2092_v32 }
 0x17f   : > { %v2115_v16 = vcombine.low %v2093_v47, %v2094_v12 }
 0x180   : > { %2128 = vst [vmem:[%s2988_s23 + $0x28] sm:$0xff] %v2114_v13 }
 0x181   : > { %2129 = vst [vmem:[%s2988_s23 + $0x30] sm:$0xff] %v2115_v16 }
 0x182   : > { %2523 = shalt.err (!%p2520_p4)
}
 0x183   : > { %s2524_s29 = scalar_lea.hbm %s3012_s10, 896  ;;  %s2528_s27 = scalar_lea.hbm %s3061_s3, 1792 }
 0x184   : > { %p2525_p5 = scmp.ne.s32.totalorder %s3012_s10, %s2524_s29  ;;  %p2529_p0 = scmp.lt.u32.totalorder %s3012_s10, %s3061_s3 }
 0x185   : > { %p2530_p1 = scmp.lt.u32.totalorder %s2528_s27, %s2524_s29  ;;  %p2532_p6 = scmp.lt.u32.totalorder %s2524_s29, %s3012_s10 }
 0x186   : > { %p2526_p8 = pnand %p2525_p5, %p3070_p11 }
 0x187   : > { %p2531_p3 = por %p2530_p1, %p2529_p0 }
 0x188   : > { %p2527_p9 = pneg %p2526_p8 }
 0x189   : > { %p2533_p12 = por %p2532_p6, %p2531_p3 }
 0x18b   : > { %p2534_p13 = pnand %p2533_p12, %p2527_p9 }
 0x18d   : > { %2537 = shalt.err (!%p2534_p13)
}
 0x18e   : > { %2377 = dma.vmem_to_hbm [thread:$0]  (%p3070_p11), %s3014_s6, 896, %s3012_s10, %s2131_s16  }
 0x18f PF: > { %s2157_s5 = sand.u32 1, %s2564_s12   ;;  %p3071_p7 = scmp.ne.s32.totalorder %s3066_s25, 0 }
 0x190   : > { %p3072_p10 = scmp.ge.s32.totalorder %s2576_s15, 2  ;;  %s2158_s9 = scalar_lea.sflag [#allocation4], %s2157_s5 }
 0x192   : > { %p2384_p2 = pnand %p3072_p10, %p3071_p7 }
 0x194   : > { %2559 = dma.done.wait (!%p2384_p2), %s2158_s9, 896  }
 0x195   : > { %2561 = vsyncadd (!%p2384_p2), %s2158_s9, 4294966400  ;;  %p16_p4 = scmp.ge.s32.totalorder %s2627_s18, 4   ;;  %s3073_s12 = smov %s2568_s13 }
 0x196   : > { %s3074_s13 = smov %s2572_s14  ;;  %s3075_s14 = smov %s2639_s21 }
 0x197   : > { %s3076_s15 = smov %s2627_s18  ;;  %18 = sbr.rel (!%p16_p4) target bundleno = 5 (0x5), region = 79 }
 0x19e   :  { %2163 = vsyncpa [#allocation3], 1 }
 0x19f   :  { %2165 = vsyncpa [#allocation3 + $0x1], 1 }
 0x1a0   :  { %2166 = vsyncpa [#allocation4], 1 }
 0x1a1   :  { %2168 = vsyncpa [#allocation4 + $0x1], 1 }

</bundles_post_ra>
